<compile_context>
chip_gen: v5e
topology: v5e:2x2
jax: 0.10.0
libtpu: 0.0.40
codegen_flags: <defaults>
</compile_context>

<pallas_src>
import jax
import jax.numpy as jnp
from jax.experimental import pallas as pl
from jax.experimental.pallas import tpu as pltpu

EMBEDDING_SIZE = 50

# Tuning knobs (sweep on real hardware; keep tb a multiple of 8).
_MAX_TB = 4096           # v5e scoped-VMEM-friendly cap; ~8 MiB double-buffered
_SMALL_CUTOFF = 1024     # grid-less path up to this many rows
_VMEM_LIMIT_BYTES = 32 * 1024 * 1024


def _round_up(x, m):
    return ((x + m - 1) // m) * m


def _linear_nobias_kernel(x_ref, wt_ref, o_ref):
    # out[B, E] = x[B, V] @ Wt[V, E]   (canonical (M,K)x(K,N) MXU contraction;
    # weight already transposed once in the wrapper, no per-step vxpose).
    o_ref[...] = jnp.dot(
        x_ref[...], wt_ref[...], preferred_element_type=jnp.float32
    ).astype(o_ref.dtype)


def _context_small(x, wt):
    """Grid-less path for small/medium batches: whole problem lives in VMEM."""
    batch = x.shape[0]
    emb = wt.shape[1]
    return pl.pallas_call(
        _linear_nobias_kernel,
        out_shape=jax.ShapeDtypeStruct((batch, emb), x.dtype),
        in_specs=[
            pl.BlockSpec(memory_space=pltpu.MemorySpace.VMEM),
            pl.BlockSpec(memory_space=pltpu.MemorySpace.VMEM),
        ],
        out_specs=pl.BlockSpec(memory_space=pltpu.MemorySpace.VMEM),
    )(x, wt)


def _context_tiled(x, wt):
    """Batch-tiled path for large batches.

    Weight (V, E) is tiny and stays VMEM-resident (constant block index);
    x / out are pipelined over the batch axis. tb is chosen so there are
    always >= 2 grid steps (lets v7x's two TensorCores split the batch) and
    the double-buffered footprint stays well inside the per-chip VMEM budget.
    """
    batch, len_voc = x.shape
    emb = wt.shape[1]

    tb = min(_MAX_TB, _round_up(pl.cdiv(batch, 2), 8))
    tb = max(tb, 8)
    grid = (pl.cdiv(batch, tb),)

    return pl.pallas_call(
        _linear_nobias_kernel,
        out_shape=jax.ShapeDtypeStruct((batch, emb), x.dtype),
        grid=grid,
        in_specs=[
            pl.BlockSpec((tb, len_voc), lambda i: (i, 0)),
            pl.BlockSpec((len_voc, emb), lambda i: (0, 0)),
        ],
        out_specs=pl.BlockSpec((tb, emb), lambda i: (i, 0)),
        compiler_params=pltpu.CompilerParams(
            dimension_semantics=("parallel",),
            vmem_limit_bytes=_VMEM_LIMIT_BYTES,
        ),
    )(x, wt)


def context_forward(x, weight):
    """Equivalent of Context.forward: x @ weight.T (no bias).

    x:      (batch, len_voc)          float32
    weight: (embedding_size, len_voc) float32  (PyTorch nn.Linear layout)
    returns (batch, embedding_size)   float32
    """
    batch, len_voc = x.shape
    emb, len_voc_w = weight.shape
    assert len_voc == len_voc_w

    # One-off tiny transpose (E,V)->(V,E) in XLA so the kernel gets the
    # natural (K, N) RHS layout every step.
    wt = weight.T

    if batch <= _SMALL_CUTOFF:
        return _context_small(x, wt)
    return _context_tiled(x, wt)


if __name__ == "__main__":
    # Small, deterministic setup consistent with the module:
    #   len_voc = 32 (input feature dim), embedding_size = 50 (output dim)
    len_voc = 32
    batch = 8

    key = jax.random.PRNGKey(0)
    k_x, k_w, k_x_big = jax.random.split(key, 3)

    # Deterministic parameter init mimicking nn.Linear default:
    # U(-1/sqrt(fan_in), 1/sqrt(fan_in)), fan_in = len_voc.
    bound = 1.0 / (len_voc ** 0.5)
    weight = jax.random.uniform(
        k_w, (EMBEDDING_SIZE, len_voc), dtype=jnp.float32,
        minval=-bound, maxval=bound,
    )
    x = jax.random.normal(k_x, (batch, len_voc), dtype=jnp.float32)

    # Small-batch (grid-less) path.
    out = jax.block_until_ready(context_forward(x, weight))
    ref = x @ weight.T
    assert out.shape == (batch, EMBEDDING_SIZE), out.shape
    assert jnp.allclose(out, ref, atol=1e-5, rtol=1e-5), "mismatch (small path)"

    # Batch-tiled (pipelined, parallel, >=2 grid steps, partial last block) path.
    big_batch = 2056  # > _SMALL_CUTOFF; tb=1032 -> grid=(2,), last block partial
    x_big = jax.random.normal(k_x_big, (big_batch, len_voc), dtype=jnp.float32)
    out_big = jax.block_until_ready(context_forward(x_big, weight))
    ref_big = x_big @ weight.T
    assert out_big.shape == (big_batch, EMBEDDING_SIZE), out_big.shape
    assert jnp.allclose(out_big, ref_big, atol=1e-5, rtol=1e-5), "mismatch (tiled path)"

    print("KERNEL_OK")
</pallas_src>

<mosaic_0001>
module attributes {stable_mosaic.version = 11 : i64} {
  func.func @_linear_nobias_kernel(%arg0: memref<8x32xf32, #tpu.memory_space<vmem>>, %arg1: memref<32x50xf32, #tpu.memory_space<vmem>>, %arg2: memref<8x50xf32, #tpu.memory_space<vmem>>) attributes {dimension_semantics = [], scalar_prefetch = 0 : i64, scratch_operands = 0 : i64, tpu.core_type = #tpu.core_type<tc>} {
    %c0 = arith.constant 0 : index
    %c0_0 = arith.constant 0 : index
    %0 = vector.load %arg0[%c0, %c0_0] : memref<8x32xf32, #tpu.memory_space<vmem>>, vector<8x32xf32>
    %c0_1 = arith.constant 0 : index
    %c0_2 = arith.constant 0 : index
    %1 = vector.load %arg1[%c0_1, %c0_2] : memref<32x50xf32, #tpu.memory_space<vmem>>, vector<32x50xf32>
    %cst = arith.constant dense<0.000000e+00> : vector<8x50xf32>
    %2 = tpu.matmul %0, %1, %cst {dimension_numbers = #tpu.dot_dimension_numbers<[1], [0], [0], [1], [0, 0, 1, 1], [], []>} : vector<8x32xf32>, vector<32x50xf32>, vector<8x50xf32> -> vector<8x50xf32>
    %c0_3 = arith.constant 0 : index
    %c0_4 = arith.constant 0 : index
    %3 = vector.load %arg2[%c0_3, %c0_4] : memref<8x50xf32, #tpu.memory_space<vmem>>, vector<8x50xf32>
    tpu.vector_store %arg2[%c0_3, %c0_4], %2 {strides = array<i32>} : memref<8x50xf32, #tpu.memory_space<vmem>>, vector<8x50xf32>,
    return
  }
}

</mosaic_0001>

<bundles_post_ra>
// kernel: tpu_custom_call.1
= control target key start
LH: loop header
LB: loop body
LE: loop exit
PB: predicated region body
PF: predicated region fallthrough
CT: control target
= control target key end

     0   :  { %7 = vsyncpa [#allocation3], 0  ;;  %s204_s0 = inlined_call_operand.hbm [shape: f32[8,32], index: 0, kind: input, shape index: {}]   ;;  %s205_s1 = inlined_call_operand.hbm [shape: f32[32,50], index: 1, kind: input, shape index: {}]   ;;  %s206_s2 = inlined_call_operand.hbm [shape: f32[8,50], index: 2, kind: output, shape index: {}]  }
   0x1   :  { %8 = vsyncpa [#allocation6], 0 }
   0x2   :  { %9 = vsyncpa [#allocation4], 0  ;;  %s15_s11 = sshll.u32 %s204_s0, 4  ;;  %s175_s12 = smov [#allocation2]   ;;  %s16_s11 = int_to_ptr.hbm [resolvable:$true] %s15_s11 }
   0x3   :  { %s17_s13 = sshll.u32 %s175_s12, 4  ;;  %s25_s16 = sshll.u32 %s205_s1, 4  ;;  %s18_s13 = int_to_ptr.vmem [resolvable:$true] %s17_s13  ;;  %s26_s16 = int_to_ptr.hbm [resolvable:$true] %s25_s16 }
   0x4   :  { %20 = dma.hbm_to_vmem [thread:$0]  %s16_s11, 128, %s18_s13, [#allocation3]  }
   0x5   :  { %s176_s17 = smov [#allocation5]   ;;  %s177_s19 = smov 128  }
   0x6   :  { %s27_s18 = sshll.u32 %s176_s17, 4  ;;  %s178_s20 = smov 8   ;;  %s28_s18 = int_to_ptr.vmem [resolvable:$true] %s27_s18 }
   0x7   :  { %33 = dma.hbm_to_vmem [thread:$0]  %s26_s16, 512, %s28_s18, [#allocation6], %s177_s19, %s177_s19, %s178_s20  }
   0x8   :  { %169 = dma.done.wait [#allocation3], 128  }
   0x9   :  { %170 = vsyncadd [#allocation3], 4294967168 }
   0xa   :  { %171 = dma.done.wait [#allocation6], 512  }
   0xb   :  { %172 = vsyncadd [#allocation6], 4294966784  ;;  %v46_v0 = vld [vmem:[#allocation5 + $0x18] sm:$0xff]  ;;  %v45_v1 = vld [vmem:[#allocation5 + $0x10] sm:$0xff]  ;;  %vm47_vm0 = vcmask 261120   ;;  %s179_s0 = smov [#allocation7]  }
   0xc   :  { %63 = vmatpush.msra.mxu0 %v46_v0  ;;  %v44_v2 = vld [vmem:[#allocation5 + $0x8] sm:$0xff]  ;;  %v43_v3 = vld [vmem:[#allocation5] sm:$0xff]  ;;  %v42_v4 = vld [vmem:[#allocation2] sm:$0xff]  ;;  %s78_s1 = sshll.u32 %s179_s0, 4  ;;  %s80_s23 = sshll.u32 %s206_s2, 4  ;;  %vm71_vm1 = vcmask 408576   ;;  %s79_s1 = int_to_ptr.vmem [resolvable:$true] %s78_s1  ;;  %s81_s23 = int_to_ptr.hbm [resolvable:$true] %s80_s23 }
   0xe   :  { %64 = vmatpush.msra.mxu0 %v45_v1 }
  0x10   :  { %65 = vmatpush.msra.mxu0 %v44_v2 }
  0x12   :  { %66 = vmatpush.msra.mxu0 %v43_v3 }
  0x13   :  { %91 = vmatmul.msk.f32.vlgmr.msra.gmra.mxu0 %vm47_vm0, %v42_v4 }
  0x90   :  { %v68_v5 = vpop.f32.mrf.mxu0 }
  0x91   :  { %72 = vst.msk [vmem:[#allocation7] sm:$0xff] %vm71_vm1, %v68_v5 }
  0x92   :  { %83 = dma.vmem_to_hbm [thread:$0]  %s79_s1, 128, %s81_s23, [#allocation4]  }
  0x93   :  { %173 = dma.done.wait [#allocation4], 128  }
  0x94   :  { %174 = vsyncadd [#allocation4], 4294967168 }
  0x95   :  { %88 = vsyncpa [#allocation3], 1 }
  0x96   :  { %89 = vsyncpa [#allocation6], 1 }
  0x97   :  { %90 = vsyncpa [#allocation4], 1 }

</bundles_post_ra>
